<compile_context>
chip_gen: v7x
topology: tpu7x:2x2x1
jax: 0.10.0
libtpu: 0.0.40
codegen_flags: <defaults>
</compile_context>

<pallas_src>
import functools

import jax
import jax.numpy as jnp
from jax.experimental import pallas as pl
from jax.experimental.pallas import tpu as pltpu


ALPHA_DEFAULT = 0.15
_MIN_PALLAS_ELEMS = 65536            # below this, dispatch overhead dominates
_TARGET_BLOCK_BYTES = 2 * 1024 * 1024  # ~2 MiB/block: ~85% HBM roofline, safe on v5e


def _cdiv(a: int, b: int) -> int:
    return -(-a // b)


def _round_up(a: int, b: int) -> int:
    return _cdiv(a, b) * b


def _telu_kernel(x_ref, o_ref, *, alpha):
    # x_ref / o_ref : (TR, COLS) tiles in VMEM
    x = x_ref[...].astype(jnp.float32)
    # exp only on the non-positive range -> no overflow in the unselected branch
    neg_branch = jnp.float32(alpha) * (jnp.exp(jnp.minimum(x, 0.0)) - 1.0)
    o_ref[...] = jnp.where(x >= 0.0, x, neg_branch).astype(o_ref.dtype)


def _telu_jnp(x, alpha: float = ALPHA_DEFAULT):
    # pure-JAX reference mirroring the PyTorch forward
    xf = x.astype(jnp.float32)
    out = jnp.where(xf >= 0.0, xf, alpha * (jnp.exp(xf) - 1.0))
    return out.astype(x.dtype)


def telu(x, alpha: float = ALPHA_DEFAULT, *, min_pallas_elems: int = _MIN_PALLAS_ELEMS):
    """Elementwise TeLU: where(x >= 0, x, alpha*(exp(x)-1)). Any shape/dtype."""
    orig_shape = x.shape
    orig_dtype = x.dtype
    n = x.size
    if n == 0:
        return x
    if n < min_pallas_elems:
        # Tiny activation: pallas_call overhead dwarfs the work; let XLA fuse.
        return _telu_jnp(x, alpha)

    itemsize = jnp.dtype(orig_dtype).itemsize

    # ---- lane-dense (rows, cols) layout, avoiding wrapper-side copies -------
    if x.ndim >= 2 and x.shape[-1] % 128 == 0:
        # Fast path: contiguous collapse of leading dims — no copy, no pad.
        cols = x.shape[-1]
        rows = n // cols
        x2d = x.reshape(rows, cols)
        padded = False
    else:
        cols = 512 if n % 512 == 0 else (256 if n % 256 == 0 else 128)
        padded_n = _round_up(n, cols)        # pad at most cols-1 elements
        padded = padded_n != n
        x_flat = x.reshape(-1)
        if padded:
            x_flat = jnp.pad(x_flat, (0, padded_n - n))
        rows = padded_n // cols
        x2d = x_flat.reshape(rows, cols)

    # ---- block sizing: by bytes (same roofline fraction for bf16 / f32) -----
    tr = max(8, (_TARGET_BLOCK_BYTES // (cols * itemsize)) // 8 * 8)
    if rows >= 16:
        # keep at least 2 grid blocks so both v7x TensorCores get work
        tr = min(tr, _round_up(_cdiv(rows, 2), 8))
    tr = max(8, min(tr, _round_up(rows, 8)))
    grid = (_cdiv(rows, tr),)                # ragged final block -> masked writes

    kernel = functools.partial(_telu_kernel, alpha=float(alpha))
    out2d = pl.pallas_call(
        kernel,
        out_shape=jax.ShapeDtypeStruct((rows, cols), orig_dtype),
        grid=grid,
        in_specs=[pl.BlockSpec((tr, cols), lambda i: (i, 0))],
        out_specs=pl.BlockSpec((tr, cols), lambda i: (i, 0)),
        compiler_params=pltpu.CompilerParams(
            dimension_semantics=("parallel",)
        ),
    )(x2d)

    if padded:
        return out2d.reshape(-1)[:n].reshape(orig_shape)
    return out2d.reshape(orig_shape)


if __name__ == "__main__":
    key = jax.random.PRNGKey(0)
    k1, k2, k3, k4, k5 = jax.random.split(key, 5)

    # (1) small MLP-shaped activation (batch=8, hidden=32): small-input fallback
    x_small = jax.random.normal(k1, (8, 32), dtype=jnp.float32) * 3.0
    # (2) medium activation, 128-aligned last dim: Pallas fast path, no pad/slice
    x_med = jax.random.normal(k2, (256, 512), dtype=jnp.float32) * 3.0
    # (3) ragged row count: exercises masked final grid block
    x_ragged = jax.random.normal(k3, (1000, 384), dtype=jnp.float32) * 3.0
    # (4) awkward shape needing a (tiny) pad to a multiple of 128
    x_pad = jax.random.normal(k4, (301, 219), dtype=jnp.float32) * 3.0

    for x in (x_small, x_med, x_ragged, x_pad):
        y = jax.block_until_ready(telu(x, alpha=ALPHA_DEFAULT))
        y_ref = jax.block_until_ready(_telu_jnp(x, ALPHA_DEFAULT))
        assert y.shape == x.shape and y.dtype == x.dtype
        assert jnp.allclose(y, y_ref, rtol=1e-6, atol=1e-6), x.shape

    # (5) bf16 dtype path (half the DMA bytes; compute stays f32 in-vreg)
    x_bf16 = (jax.random.normal(k5, (512, 256), dtype=jnp.float32) * 3.0).astype(jnp.bfloat16)
    y = jax.block_until_ready(telu(x_bf16, alpha=ALPHA_DEFAULT))
    y_ref = jax.block_until_ready(_telu_jnp(x_bf16, ALPHA_DEFAULT))
    assert y.shape == x_bf16.shape and y.dtype == jnp.bfloat16
    assert jnp.allclose(y.astype(jnp.float32), y_ref.astype(jnp.float32),
                        rtol=1e-2, atol=1e-2)

    print("KERNEL_OK")
</pallas_src>

<mosaic_0001>
module attributes {stable_mosaic.version = 11 : i64} {
  func.func @_telu_kernel(%arg0: i32, %arg1: memref<128x512xf32, #tpu.memory_space<vmem>>, %arg2: memref<128x512xf32, #tpu.memory_space<vmem>>) attributes {dimension_semantics = [#tpu.dimension_semantics<parallel>], iteration_bounds = array<i64: 2>, scalar_prefetch = 0 : i64, scratch_operands = 0 : i64, tpu.core_type = #tpu.core_type<tc>, window_params = [{transform_indices = @transform_0, window_bounds = array<i64: 128, 512>}, {transform_indices = @transform_1, window_bounds = array<i64: 128, 512>}]} {
    %c0 = arith.constant 0 : index
    %c0_0 = arith.constant 0 : index
    %0 = vector.load %arg1[%c0, %c0_0] : memref<128x512xf32, #tpu.memory_space<vmem>>, vector<128x512xf32>
    %cst = arith.constant 0.000000e+00 : f32
    %1 = vector.broadcast %cst : f32 to vector<128x512xf32>
    %2 = arith.minimumf %0, %1 : vector<128x512xf32>
    %3 = math.exp %2 : vector<128x512xf32>
    %cst_1 = arith.constant 1.000000e+00 : f32
    %4 = vector.broadcast %cst_1 : f32 to vector<128x512xf32>
    %5 = arith.subf %3, %4 : vector<128x512xf32>
    %cst_2 = arith.constant 1.500000e-01 : f32
    %6 = vector.broadcast %cst_2 : f32 to vector<128x512xf32>
    %7 = arith.mulf %6, %5 : vector<128x512xf32>
    %cst_3 = arith.constant 0.000000e+00 : f32
    %8 = vector.broadcast %cst_3 : f32 to vector<128x512xf32>
    %9 = arith.cmpf oge, %0, %8 : vector<128x512xf32>
    %10 = arith.select %9, %0, %7 : vector<128x512xi1>, vector<128x512xf32>
    %c0_4 = arith.constant 0 : index
    %c0_5 = arith.constant 0 : index
    %11 = vector.load %arg2[%c0_4, %c0_5] : memref<128x512xf32, #tpu.memory_space<vmem>>, vector<128x512xf32>
    tpu.vector_store %arg2[%c0_4, %c0_5], %10 {strides = array<i32>} : memref<128x512xf32, #tpu.memory_space<vmem>>, vector<128x512xf32>,
    return
  }
  func.func @transform_0(%arg0: i32) -> (i32, i32) {
    %c0_i32 = arith.constant 0 : i32
    %c0_i32_0 = arith.constant 0 : i32
    return %arg0, %c0_i32 : i32, i32
  }
  func.func @transform_1(%arg0: i32) -> (i32, i32) {
    %c0_i32 = arith.constant 0 : i32
    %c0_i32_0 = arith.constant 0 : i32
    return %arg0, %c0_i32 : i32, i32
  }
}

</mosaic_0001>

<bundles_post_ra>
// kernel: tpu_custom_call.1
= control target key start
LH: loop header
LB: loop body
LE: loop exit
PB: predicated region body
PF: predicated region fallthrough
CT: control target
= control target key end

     0   :  { %6 = vsyncpa [#allocation3], 0  ;;  %s1895_s0 = inlined_call_operand.hbm [shape: f32[256,512], index: 0, kind: input, shape index: {}]   ;;  %s1896_s1 = inlined_call_operand.hbm [shape: f32[256,512], index: 1, kind: output, shape index: {}]  }
   0x1   :  { %8 = vsyncpa [#allocation3 + $0x1], 0 }
   0x2   :  { %9 = vsyncpa [#allocation4], 0 }
   0x3   :  { %11 = vsyncpa [#allocation4 + $0x1], 0  ;;  %s1178_s6 = smov 0   ;;  %s1180_s7 = smov 0  }
   0x4   :  { %s1182_s8 = smov 0   ;;  %s1184_s9 = smov 0  }
   0x5 LB: > { %s1199_s10 = sadd.s32 4294967295, %s1160_s9   ;;  %s802_s11 = sadd.s32 4294967294, %s1160_s9   ;;  %s1160_s9 = sphi %s1184_s9, %s1909_s9   ;;  %s1156_s8 = sphi %s1182_s8, %s1908_s8   ;;  %s1152_s7 = sphi %s1180_s7, %s1907_s7   ;;  %s1148_s6 = sphi %s1178_s6, %s1906_s6  }
   0x6   : > { %s1203_s12 = sadd.s32 1, %s1160_s9   ;;  %s24_s13 = sadd.s32 1, %s1156_s8 }
   0x7   : > { %s21_s14 = ssub.s32 %s1160_s9, %s1203_s12  ;;  %p31_p0 = scmp.ne.s32.totalorder %s1156_s8, %s1152_s7 }
   0x8   : > { %p22_p1 = scmp.eq.s32.totalorder %s21_s14, 0  ;;  %p32_p2 = scmp.eq.s32.totalorder %s1160_s9, 0 }
   0x9   : > { %p37_p3 = scmp.ne.s32.totalorder %s1152_s7, %s1148_s6  ;;  %p38_p4 = scmp.eq.s32.totalorder %s1199_s10, 0 }
   0xa   : > { %s1215_s15 = scalar_select %p22_p1, %s1156_s8, %s24_s13  }
   0xb   : > { %p1217_p5 = por %p32_p2, %p31_p0  ;;  %p1221_p6 = por %p38_p4, %p37_p3 }
   0xc   : > { %p61_p7 = scmp.eq.s32.totalorder %s1199_s10, 1  ;;  %p67_p8 = scmp.eq.s32.totalorder %s802_s11, 1 }
   0xd   : > { %p898_p10 = scmp.lt.s32.totalorder %s1160_s9, 2  ;;  %s87_s20 = sand.u32 1, %s1156_s8  }
   0xe   : > { %p1228_p11 = por %p61_p7, %p31_p0  ;;  %p1232_p12 = por %p67_p8, %p37_p3 }
   0xf   : > { %s883_s21 = sshll.u32 %s1160_s9, 13  ;;  %s805_s22 = sshll.u32 %s87_s20, 9 }
  0x10   : > { %s1900_s18 = scalar_select %p1228_p11, 1, 0 }
  0x11   : > { %s1901_s19 = scalar_select %p1232_p12, 1, 0 }
  0x12   : > { %s1241_s25 = scalar_lea.hbm %s1895_s0, %s883_s21  ;;  %s91_s26 = scalar_lea.vmem [#allocation2], %s805_s22 }
  0x13   : > { %s99_s27 = sshll.u32 %s91_s26, 4  ;;  %p1245_p13 = pnand %p898_p10, %p1217_p5  ;;  %s1249_s27 = int_to_ptr.vmem [resolvable:$true] %s99_s27 }
  0x14   : > { %s1251_s29 = scalar_lea.sflag [#allocation3], %s87_s20  ;;  %s1064_s30 = scalar_lea.hbm %s1241_s25, 8192 }
  0x15   : > { %p1065_p0 = scmp.ne.s32.totalorder %s1241_s25, %s1064_s30  ;;  %p1066_p1 = pneg %p1245_p13 }
  0x16   : > { %s1069_s4 = scalar_lea.hbm %s1895_s0, 16384  ;;  %p1070_p4 = scmp.lt.u32.totalorder %s1241_s25, %s1895_s0 }
  0x17   : > { %p1067_p2 = pnand %p1066_p1, %p1065_p0  ;;  %p1071_p5 = scmp.lt.u32.totalorder %s1069_s4, %s1064_s30 }
  0x18   : > { %p1073_p8 = scmp.lt.u32.totalorder %s1064_s30, %s1241_s25 }
  0x19   : > { %p1068_p3 = pneg %p1067_p2  ;;  %p1072_p7 = por %p1071_p5, %p1070_p4 }
  0x1b   : > { %p1074_p10 = por %p1073_p8, %p1072_p7 }
  0x1d   : > { %p1075_p9 = pnand %p1074_p10, %p1068_p3 }
  0x1f   : > { %1078 = shalt.err (!%p1075_p9)
}
  0x20   : > { %s1079_s13 = scalar_lea.vmem %s1249_s27, 8192  ;;  %s1162_s14 = smov [#allocation2]  }
  0x21   : > { %p1080_p0 = scmp.ne.s32.totalorder %s1249_s27, %s1079_s13  ;;  %s1084_s16 = sshll.u32 %s1162_s14, 4  ;;  %s1085_s16 = int_to_ptr.vmem [resolvable:$false] %s1084_s16 }
  0x22   : > { %s1086_s20 = scalar_lea.vmem %s1085_s16, 16384  ;;  %p1087_p11 = scmp.lt.s32.totalorder %s1249_s27, %s1085_s16 }
  0x23   : > { %p1082_p2 = pnand %p1080_p0, %p1066_p1  ;;  %p1088_p4 = scmp.lt.s32.totalorder %s1086_s20, %s1079_s13 }
  0x25   : > { %p1083_p12 = pneg %p1082_p2  ;;  %p1089_p5 = por %p1088_p4, %p1087_p11 }
  0x27   : > { %p1090_p7 = pnand %p1089_p5, %p1083_p12 }
  0x29   : > { %1093 = shalt.err (!%p1090_p7)
}
  0x2a   : > { %s1163_s21 = smov 512   ;;  %s1164_s22 = smov 32  }
  0x2b   : > { %893 = dma.hbm_to_vmem [thread:$0]  (!%p1245_p13), %s1241_s25, 8192, %s1249_s27, %s1251_s29, %s1163_s21, %s1163_s21, %s1164_s22  }
  0x2c   : > { %p809_p9 = scmp.ge.s32.totalorder %s1160_s9, 1  ;;  %p107_p1 = scmp.lt.s32.totalorder %s1160_s9, 3 }
  0x2e   : > { %p108_p3 = pnand %p809_p9, %p107_p1 }
  0x2f   : > { %s1282_s23 = sand.u32 (!%p108_p3), 1, %s1152_s7  }
  0x30   : > { %111 = sbr.rel (%p108_p3) target bundleno = 194 (0xc2), region = 24  ;;  %s810_s24 = sshll.u32 (!%p108_p3), %s1282_s23, 9 }
  0x31   : > { %s114_s26 = scalar_lea.sflag (!%p108_p3), [#allocation3], %s1282_s23  ;;  %s1288_s30 = scalar_lea.vmem (!%p108_p3), [#allocation2], %s810_s24 }
  0x37   : > { %1139 = dma.done.wait (%p1221_p6), %s114_s26, 8192  }
  0x38   : > { %1141 = vsyncadd (%p1221_p6), %s114_s26, 4294959104  ;;  %v1295_v0 = vld [vmem:[%s1288_s30] sm:$0xff]  ;;  %v1298_v1 = vld [vmem:[%s1288_s30 + $0x8] sm:$0xff]  ;;  %s1387_s17 = scalar_lea.vmem [#allocation5], %s810_s24  ;;  %s885_s25 = sshll.u32 %s1199_s10, 13 }
  0x39   : > { %v1301_v2 = vld [vmem:[%s1288_s30 + $0x10] sm:$0xff]  ;;  %v202_v3 = vmin.f32 %v1295_v0, 0.0  ;;  %v203_v4 = vmin.f32 %v1298_v1, 0.0  ;;  %v1306_v5 = vld [vmem:[%s1288_s30 + $0x18] sm:$0xff]  ;;  %v1309_v6 = vld [vmem:[%s1288_s30 + $0x20] sm:$0xff]  ;;  %vm522_vm0 = vcmp.ge.f32.partialorder %v1295_v0, 0.0  ;;  %s1844_s29 = scalar_lea.hbm %s1896_s1, %s885_s25 }
  0x3a   : > { %v204_v7 = vmin.f32 %v1301_v2, 0.0  ;;  %v205_v8 = vmin.f32 %v1306_v5, 0.0  ;;  %v1314_v9 = vld [vmem:[%s1288_s30 + $0x28] sm:$0xff]  ;;  %v1317_v10 = vld [vmem:[%s1288_s30 + $0x30] sm:$0xff]  ;;  %v206_v13 = vmin.f32 %v1309_v6, 0.0  ;;  %v1323_v19 = vld [vmem:[%s1288_s30 + $0x38] sm:$0xff] }
  0x3b   : > { %v266_v11 = vmul.f32 1.442695, %v202_v3  ;;  %v268_v12 = vmul.f32 1.442695, %v203_v4  ;;  %v207_v16 = vmin.f32 %v1314_v9, 0.0  ;;  %v208_v18 = vmin.f32 %v1317_v10, 0.0 }
  0x3c   : > { %v270_v14 = vmul.f32 1.442695, %v204_v7  ;;  %v272_v15 = vmul.f32 1.442695, %v205_v8  ;;  %v274_v17 = vmul.f32 1.442695, %v206_v13 }
  0x3d   : > { %936 = vpow2.f32 %v266_v11  ;;  %v1326_v20 = vld [vmem:[%s1288_s30 + $0x40] sm:$0xff]  ;;  %v276_v21 = vmul.f32 1.442695, %v207_v16  ;;  %v209_v22 = vmin.f32 %v1323_v19, 0.0  ;;  %v1330_v23 = vld [vmem:[%s1288_s30 + $0x48] sm:$0xff]  ;;  %v1333_v24 = vld [vmem:[%s1288_s30 + $0x50] sm:$0xff] }
  0x3e   : > { %938 = vpow2.f32 %v268_v12  ;;  %v278_v25 = vmul.f32 1.442695, %v208_v18  ;;  %v210_v26 = vmin.f32 %v1326_v20, 0.0  ;;  %v1337_v27 = vld [vmem:[%s1288_s30 + $0x58] sm:$0xff]  ;;  %v211_v29 = vmin.f32 %v1330_v23, 0.0  ;;  %v1341_v30 = vld [vmem:[%s1288_s30 + $0x60] sm:$0xff] }
  0x3f   : > { %940 = vpow2.f32 %v270_v14  ;;  %v280_v28 = vmul.f32 1.442695, %v209_v22  ;;  %v212_v32 = vmin.f32 %v1333_v24, 0.0  ;;  %v1346_v33 = vld [vmem:[%s1288_s30 + $0x68] sm:$0xff]  ;;  %vm523_vm1 = vcmp.ge.f32.partialorder %v1298_v1, 0.0  ;;  %v1351_v36 = vld [vmem:[%s1288_s30 + $0x70] sm:$0xff] }
  0x40   : > { %942 = vpow2.f32 %v272_v15  ;;  %v282_v31 = vmul.f32 1.442695, %v210_v26  ;;  %v284_v34 = vmul.f32 1.442695, %v211_v29  ;;  %v213_v35 = vmin.f32 %v1337_v27, 0.0  ;;  %v1356_v39 = vld [vmem:[%s1288_s30 + $0x78] sm:$0xff] }
  0x41   : > { %944 = vpow2.f32 %v274_v17  ;;  %vm524_vm2 = vcmp.ge.f32.partialorder %v1301_v2, 0.0  ;;  %v286_v37 = vmul.f32 1.442695, %v212_v32  ;;  %v214_v38 = vmin.f32 %v1341_v30, 0.0  ;;  %v1361_v42 = vld [vmem:[%s1288_s30 + $0x80] sm:$0xff]  ;;  %v1366_v45 = vld [vmem:[%s1288_s30 + $0x88] sm:$0xff] }
  0x42   : > { %946 = vpow2.f32 %v276_v21  ;;  %vm525_vm3 = vcmp.ge.f32.partialorder %v1306_v5, 0.0  ;;  %v288_v40 = vmul.f32 1.442695, %v213_v35  ;;  %v215_v41 = vmin.f32 %v1346_v33, 0.0  ;;  %v1375_v55 = vld [vmem:[%s1288_s30 + $0x90] sm:$0xff]  ;;  %s729_s27 = sshll.u32 %s1387_s17, 4  ;;  %s1846_s27 = int_to_ptr.vmem [resolvable:$true] %s729_s27 }
  0x43   : > { %948 = vpow2.f32 %v278_v25  ;;  %vm526_vm4 = vcmp.ge.f32.partialorder %v1309_v6, 0.0  ;;  %v290_v43 = vmul.f32 1.442695, %v214_v38  ;;  %v216_v44 = vmin.f32 %v1351_v36, 0.0  ;;  %s715_s2 = scalar_lea.sflag [#allocation4], %s1282_s23  ;;  %s1094_s3 = scalar_lea.vmem %s1846_s27, 8192 }
  0x44   : > { %950 = vpow2.f32 %v280_v28  ;;  %vm527_vm5 = vcmp.ge.f32.partialorder %v1314_v9, 0.0  ;;  %v292_v46 = vmul.f32 1.442695, %v215_v41  ;;  %v217_v47 = vmin.f32 %v1356_v39, 0.0  ;;  %p1095_p6 = scmp.ne.s32.totalorder %s1846_s27, %s1094_s3  ;;  %p1903_p11 = scmp.ne.s32.totalorder %s1900_s18, 0 }
  0x45   : > { %952 = vpow2.f32 %v282_v31  ;;  %vm528_vm6 = vcmp.ge.f32.partialorder %v1317_v10, 0.0  ;;  %v294_v49 = vmul.f32 1.442695, %v216_v44  ;;  %v218_v50 = vmin.f32 %v1361_v42, 0.0  ;;  %v1404_v31 = vld [vmem:[%s1288_s30 + $0x98] sm:$0xff]  ;;  %s1165_s4 = smov [#allocation5]  }
  0x46   : > { %954 = vpow2.f32 %v284_v34  ;;  %vm529_vm7 = vcmp.ge.f32.partialorder %v1323_v19, 0.0  ;;  %v296_v53 = vmul.f32 1.442695, %v217_v47  ;;  %v219_v54 = vmin.f32 %v1366_v45, 0.0  ;;  %v1421_v47 = vld [vmem:[%s1288_s30 + $0xa0] sm:$0xff]  ;;  %p1096_p12 = pnand %p1095_p6, %p1903_p11  ;;  %s1098_s5 = sshll.u32 %s1165_s4, 4  ;;  %s1099_s5 = int_to_ptr.vmem [resolvable:$false] %s1098_s5 }
  0x47   : > { %v937_v48 = vpop.eup %936  ;;  %956 = vpow2.f32 %v286_v37  ;;  %vm530_vm8 = vcmp.ge.f32.partialorder %v1326_v20, 0.0  ;;  %v298_v58 = vmul.f32 1.442695, %v218_v50  ;;  %vm531_vm9 = vcmp.ge.f32.partialorder %v1330_v23, 0.0  ;;  %s1100_s11 = scalar_lea.vmem %s1099_s5, 16384  ;;  %p1101_p8 = scmp.lt.s32.totalorder %s1846_s27, %s1099_s5 }
  0x48   : > { %v939_v51 = vpop.eup %938  ;;  %v812_v52 = vadd.f32 -1.0, %v937_v48  ;;  %958 = vpow2.f32 %v288_v40  ;;  %v300_v62 = vmul.f32 1.442695, %v219_v54  ;;  %vm532_vm10 = vcmp.ge.f32.partialorder %v1333_v24, 0.0  ;;  %p1097_p13 = pneg %p1096_p12  ;;  %p1102_p10 = scmp.lt.s32.totalorder %s1100_s11, %s1094_s3 }
  0x49   : > { %v941_v56 = vpop.eup %940  ;;  %v813_v57 = vadd.f32 -1.0, %v939_v51  ;;  %960 = vpow2.f32 %v290_v43  ;;  %v220_v7 = vmin.f32 %v1375_v55, 0.0  ;;  %vm533_vm11 = vcmp.ge.f32.partialorder %v1337_v27, 0.0 }
  0x4a   : > { %v943_v59 = vpop.eup %942  ;;  %v458_v60 = vmul.f32 0.15, %v812_v52  ;;  %v814_v61 = vadd.f32 -1.0, %v941_v56  ;;  %962 = vpow2.f32 %v292_v46  ;;  %vm534_vm12 = vcmp.ge.f32.partialorder %v1341_v30, 0.0  ;;  %p1103_p0 = por %p1102_p10, %p1101_p8 }
  0x4b   : > { %v945_v63 = vpop.eup %944  ;;  %v459_v3 = vmul.f32 0.15, %v813_v57  ;;  %v815_v4 = vadd.f32 -1.0, %v943_v59  ;;  %964 = vpow2.f32 %v294_v49  ;;  %vm535_vm13 = vcmp.ge.f32.partialorder %v1346_v33, 0.0 }
  0x4c   : > { %v947_v8 = vpop.eup %946  ;;  %v586_v11 = vsel %vm522_vm0, %v1295_v0, %v458_v60  ;;  %v460_v12 = vmul.f32 0.15, %v814_v61  ;;  %v816_v13 = vadd.f32 -1.0, %v945_v63  ;;  %966 = vpow2.f32 %v296_v53  ;;  %p1104_p2 = pnand %p1103_p0, %p1097_p13 }
  0x4d   : > { %v949_v14 = vpop.eup %948  ;;  %650 = vst [vmem:[%s1387_s17] sm:$0xff] %v586_v11  ;;  %v587_v15 = vsel %vm523_vm1, %v1298_v1, %v459_v3  ;;  %v461_v16 = vmul.f32 0.15, %v815_v4  ;;  %v817_v17 = vadd.f32 -1.0, %v947_v8  ;;  %968 = vpow2.f32 %v298_v58  ;;  %v1446_v8 = vld [vmem:[%s1288_s30 + $0xa8] sm:$0xff] }
  0x4e   : > { %v951_v0 = vpop.eup %950  ;;  %651 = vst [vmem:[%s1387_s17 + $0x8] sm:$0xff] %v587_v15  ;;  %v588_v18 = vsel %vm524_vm2, %v1301_v2, %v460_v12  ;;  %v462_v21 = vmul.f32 0.15, %v816_v13  ;;  %v818_v22 = vadd.f32 -1.0, %v949_v14  ;;  %970 = vpow2.f32 %v300_v62 }
  0x4f   : > { %v953_v1 = vpop.eup %952  ;;  %652 = vst [vmem:[%s1387_s17 + $0x10] sm:$0xff] %v588_v18  ;;  %v589_v25 = vsel %vm525_vm3, %v1306_v5, %v461_v16  ;;  %v463_v26 = vmul.f32 0.15, %v817_v17  ;;  %v819_v28 = vadd.f32 -1.0, %v951_v0  ;;  %v302_v29 = vmul.f32 1.442695, %v220_v7 }
  0x50   : > { %v955_v32 = vpop.eup %954  ;;  %653 = vst [vmem:[%s1387_s17 + $0x18] sm:$0xff] %v589_v25  ;;  %v590_v2 = vsel %vm526_vm4, %v1309_v6, %v462_v21  ;;  %v464_v34 = vmul.f32 0.15, %v818_v22  ;;  %v820_v35 = vadd.f32 -1.0, %v953_v1  ;;  %vm536_vm14 = vcmp.ge.f32.partialorder %v1351_v36, 0.0  ;;  %v1461_v17 = vld [vmem:[%s1288_s30 + $0xb8] sm:$0xff] }
  0x51   : > { %v957_v37 = vpop.eup %956  ;;  %654 = vst [vmem:[%s1387_s17 + $0x20] sm:$0xff] %v590_v2  ;;  %v591_v5 = vsel %vm527_vm5, %v1314_v9, %v463_v26  ;;  %v465_v38 = vmul.f32 0.15, %v819_v28  ;;  %v821_v40 = vadd.f32 -1.0, %v955_v32  ;;  %972 = vpow2.f32 %v302_v29  ;;  %v1470_v21 = vld [vmem:[%s1288_s30 + $0xc0] sm:$0xff]  ;;  %v1483_v32 = vld [vmem:[%s1288_s30 + $0xc8] sm:$0xff] }
  0x52   : > { %v959_v41 = vpop.eup %958  ;;  %655 = vst [vmem:[%s1387_s17 + $0x28] sm:$0xff] %v591_v5  ;;  %v592_v6 = vsel %vm528_vm6, %v1317_v10, %v464_v34  ;;  %v466_v43 = vmul.f32 0.15, %v820_v35  ;;  %v822_v44 = vadd.f32 -1.0, %v957_v37  ;;  %v221_v46 = vmin.f32 %v1404_v31, 0.0  ;;  %v1490_v35 = vld [vmem:[%s1288_s30 + $0xd0] sm:$0xff] }
  0x53   : > { %v961_v48 = vpop.eup %960  ;;  %656 = vst [vmem:[%s1387_s17 + $0x30] sm:$0xff] %v592_v6  ;;  %v593_v9 = vsel %vm529_vm7, %v1323_v19, %v465_v38  ;;  %v467_v49 = vmul.f32 0.15, %v821_v40  ;;  %v823_v50 = vadd.f32 -1.0, %v959_v41  ;;  %vm537_vm15 = vcmp.ge.f32.partialorder %v1356_v39, 0.0  ;;  %v1494_v5 = vld [vmem:[%s1288_s30 + $0xd8] sm:$0xff] }
  0x54   : > { %v963_v51 = vpop.eup %962  ;;  %657 = vst [vmem:[%s1387_s17 + $0x38] sm:$0xff] %v593_v9  ;;  %v594_v10 = vsel %vm530_vm8, %v1326_v20, %v466_v43  ;;  %v468_v52 = vmul.f32 0.15, %v822_v44  ;;  %v824_v53 = vadd.f32 -1.0, %v961_v48  ;;  %v304_v54 = vmul.f32 1.442695, %v221_v46 }
  0x55   : > { %v965_v56 = vpop.eup %964  ;;  %658 = vst [vmem:[%s1387_s17 + $0x40] sm:$0xff] %v594_v10  ;;  %v595_v19 = vsel %vm531_vm9, %v1330_v23, %v467_v49  ;;  %v469_v57 = vmul.f32 0.15, %v823_v50  ;;  %v825_v58 = vadd.f32 -1.0, %v963_v51  ;;  %v222_v59 = vmin.f32 %v1421_v47, 0.0  ;;  %v1504_v44 = vld [vmem:[%s1288_s30 + $0xe8] sm:$0xff] }
  0x56   : > { %v967_v60 = vpop.eup %966  ;;  %659 = vst [vmem:[%s1387_s17 + $0x48] sm:$0xff] %v595_v19  ;;  %v596_v20 = vsel %vm532_vm10, %v1333_v24, %v468_v52  ;;  %v470_v61 = vmul.f32 0.15, %v824_v53  ;;  %v826_v62 = vadd.f32 -1.0, %v965_v56  ;;  %974 = vpow2.f32 %v304_v54  ;;  %v1512_v50 = vld [vmem:[%s1288_s30 + $0xf0] sm:$0xff]  ;;  %v1517_v54 = vld [vmem:[%s1288_s30 + $0xf8] sm:$0xff] }
  0x57   : > { %v969_v63 = vpop.eup %968  ;;  %660 = vst [vmem:[%s1387_s17 + $0x50] sm:$0xff] %v596_v20  ;;  %v597_v23 = vsel %vm533_vm11, %v1337_v27, %v469_v57  ;;  %v471_v3 = vmul.f32 0.15, %v825_v58  ;;  %v827_v4 = vadd.f32 -1.0, %v967_v60  ;;  %v306_v7 = vmul.f32 1.442695, %v222_v59 }
  0x58   : > { %v971_v11 = vpop.eup %970  ;;  %661 = vst [vmem:[%s1387_s17 + $0x58] sm:$0xff] %v597_v23  ;;  %v598_v24 = vsel %vm534_vm12, %v1341_v30, %v470_v61  ;;  %v472_v12 = vmul.f32 0.15, %v826_v62  ;;  %v828_v13 = vadd.f32 -1.0, %v969_v63  ;;  %vm538_vm0 = vcmp.ge.f32.partialorder %v1361_v42, 0.0  ;;  %v1454_v27 = vld [vmem:[%s1288_s30 + $0xb0] sm:$0xff] }
  0x59   : > { %662 = vst [vmem:[%s1387_s17 + $0x60] sm:$0xff] %v598_v24  ;;  %v599_v14 = vsel %vm535_vm13, %v1346_v33, %v471_v3  ;;  %v473_v15 = vmul.f32 0.15, %v827_v4  ;;  %v829_v16 = vadd.f32 -1.0, %v971_v11  ;;  %976 = vpow2.f32 %v306_v7  ;;  %v1521_v57 = vld [vmem:[%s1288_s30 + $0x100] sm:$0xff]  ;;  %v1528_v20 = vld [vmem:[%s1288_s30 + $0x108] sm:$0xff] }
  0x5a   : > { %663 = vst [vmem:[%s1387_s17 + $0x68] sm:$0xff] %v599_v14  ;;  %v600_v30 = vsel %vm536_vm14, %v1351_v36, %v472_v12  ;;  %v474_v0 = vmul.f32 0.15, %v828_v13  ;;  %vm539_vm1 = vcmp.ge.f32.partialorder %v1366_v45, 0.0  ;;  %v223_v18 = vmin.f32 %v1446_v8, 0.0  ;;  %v1536_v23 = vld [vmem:[%s1288_s30 + $0x110] sm:$0xff] }
  0x5b   : > { %v973_v33 = vpop.eup %972  ;;  %664 = vst [vmem:[%s1387_s17 + $0x70] sm:$0xff] %v600_v30  ;;  %v601_v22 = vsel %vm537_vm15, %v1356_v39, %v473_v15  ;;  %v475_v1 = vmul.f32 0.15, %v829_v16  ;;  %v224_v25 = vmin.f32 %v1454_v27, 0.0  ;;  %v225_v29 = vmin.f32 %v1461_v17, 0.0 }
  0x5c   : > { %665 = vst [vmem:[%s1387_s17 + $0x78] sm:$0xff] %v601_v22  ;;  %v602_v36 = vsel %vm538_vm0, %v1361_v42, %v474_v0  ;;  %v830_v26 = vadd.f32 -1.0, %v973_v33  ;;  %v308_v28 = vmul.f32 1.442695, %v223_v18  ;;  %vm540_vm2 = vcmp.ge.f32.partialorder %v1375_v55, 0.0 }
  0x5d   : > { %666 = vst [vmem:[%s1387_s17 + $0x80] sm:$0xff] %v602_v36  ;;  %v603_v2 = vsel %vm539_vm1, %v1366_v45, %v475_v1  ;;  %v310_v39 = vmul.f32 1.442695, %v224_v25  ;;  %v226_v34 = vmin.f32 %v1470_v21, 0.0  ;;  %v312_v37 = vmul.f32 1.442695, %v225_v29 }
  0x5e   : > { %667 = vst [vmem:[%s1387_s17 + $0x88] sm:$0xff] %v603_v2  ;;  %v476_v42 = vmul.f32 0.15, %v830_v26  ;;  %978 = vpow2.f32 %v308_v28  ;;  %v227_v40 = vmin.f32 %v1483_v32, 0.0  ;;  %v1498_v45 = vld [vmem:[%s1288_s30 + $0xe0] sm:$0xff]  ;;  %vm541_vm3 = vcmp.ge.f32.partialorder %v1404_v31, 0.0 }
  0x5f   : > { %980 = vpow2.f32 %v310_v39  ;;  %v314_v38 = vmul.f32 1.442695, %v226_v34  ;;  %v228_v43 = vmin.f32 %v1490_v35, 0.0  ;;  %v229_v9 = vmin.f32 %v1494_v5, 0.0  ;;  %v1551_v36 = vld [vmem:[%s1288_s30 + $0x120] sm:$0xff] }
  0x60   : > { %v975_v41 = vpop.eup %974  ;;  %v604_v6 = vsel %vm540_vm2, %v1375_v55, %v476_v42  ;;  %982 = vpow2.f32 %v312_v37  ;;  %v316_v48 = vmul.f32 1.442695, %v227_v40  ;;  %vm542_vm4 = vcmp.ge.f32.partialorder %v1421_v47, 0.0 }
  0x61   : > { %668 = vst [vmem:[%s1387_s17 + $0x90] sm:$0xff] %v604_v6  ;;  %v831_v46 = vadd.f32 -1.0, %v975_v41  ;;  %984 = vpow2.f32 %v314_v38  ;;  %vm543_vm5 = vcmp.ge.f32.partialorder %v1446_v8, 0.0  ;;  %v318_v55 = vmul.f32 1.442695, %v228_v43  ;;  %v1568_v43 = vld [vmem:[%s1288_s30 + $0x128] sm:$0xff] }
  0x62   : > { %v230_v49 = vmin.f32 %v1498_v45, 0.0  ;;  %vm544_vm6 = vcmp.ge.f32.partialorder %v1454_v27, 0.0  ;;  %986 = vpow2.f32 %v316_v48  ;;  %v320_v52 = vmul.f32 1.442695, %v229_v9 }
  0x63   : > { %v977_v51 = vpop.eup %976  ;;  %v477_v10 = vmul.f32 0.15, %v831_v46  ;;  %v231_v53 = vmin.f32 %v1504_v44, 0.0  ;;  %vm545_vm7 = vcmp.ge.f32.partialorder %v1461_v17, 0.0  ;;  %988 = vpow2.f32 %v318_v55 }
  0x64   : > { %v832_v56 = vadd.f32 -1.0, %v977_v51  ;;  %v322_v19 = vmul.f32 1.442695, %v230_v49  ;;  %990 = vpow2.f32 %v320_v52  ;;  %v232_v60 = vmin.f32 %v1512_v50, 0.0 }
  0x65   : > { %v605_v58 = vsel %vm541_vm3, %v1404_v31, %v477_v10  ;;  %v324_v59 = vmul.f32 1.442695, %v231_v53  ;;  %vm546_vm8 = vcmp.ge.f32.partialorder %v1470_v21, 0.0  ;;  %v233_v62 = vmin.f32 %v1517_v54, 0.0 }
  0x66   : > { %669 = vst [vmem:[%s1387_s17 + $0x98] sm:$0xff] %v605_v58  ;;  %v478_v61 = vmul.f32 0.15, %v832_v56  ;;  %992 = vpow2.f32 %v322_v19  ;;  %vm547_vm9 = vcmp.ge.f32.partialorder %v1483_v32, 0.0  ;;  %v326_v63 = vmul.f32 1.442695, %v232_v60 }
  0x67   : > { %994 = vpow2.f32 %v324_v59  ;;  %v234_v31 = vmin.f32 %v1521_v57, 0.0  ;;  %vm548_vm10 = vcmp.ge.f32.partialorder %v1490_v35, 0.0  ;;  %v328_v7 = vmul.f32 1.442695, %v233_v62  ;;  %v1581_v56 = vld [vmem:[%s1288_s30 + $0x130] sm:$0xff] }
  0x68   : > { %v979_v3 = vpop.eup %978  ;;  %v606_v4 = vsel %vm542_vm4, %v1421_v47, %v478_v61  ;;  %v235_v11 = vmin.f32 %v1528_v20, 0.0  ;;  %vm549_vm11 = vcmp.ge.f32.partialorder %v1494_v5, 0.0  ;;  %996 = vpow2.f32 %v326_v63  ;;  %v1547_v47 = vld [vmem:[%s1288_s30 + $0x118] sm:$0xff] }
  0x69   : > { %v981_v24 = vpop.eup %980  ;;  %670 = vst [vmem:[%s1387_s17 + $0xa0] sm:$0xff] %v606_v4  ;;  %v833_v12 = vadd.f32 -1.0, %v979_v3  ;;  %v330_v13 = vmul.f32 1.442695, %v234_v31  ;;  %998 = vpow2.f32 %v328_v7  ;;  %v236_v30 = vmin.f32 %v1536_v23, 0.0  ;;  %v1593_v31 = vld [vmem:[%s1288_s30 + $0x138] sm:$0xff] }
  0x6a   : > { %v983_v14 = vpop.eup %982  ;;  %v834_v15 = vadd.f32 -1.0, %v981_v24  ;;  %v332_v16 = vmul.f32 1.442695, %v235_v11  ;;  %vm550_vm12 = vcmp.ge.f32.partialorder %v1498_v45, 0.0  ;;  %vm551_vm13 = vcmp.ge.f32.partialorder %v1504_v44, 0.0  ;;  %v1602_v11 = vld [vmem:[%s1288_s30 + $0x140] sm:$0xff] }
  0x6b   : > { %v985_v0 = vpop.eup %984  ;;  %v479_v18 = vmul.f32 0.15, %v833_v12  ;;  %v835_v33 = vadd.f32 -1.0, %v983_v14  ;;  %1000 = vpow2.f32 %v330_v13  ;;  %v334_v25 = vmul.f32 1.442695, %v236_v30 }
  0x6c   : > { %v480_v22 = vmul.f32 0.15, %v834_v15  ;;  %v836_v1 = vadd.f32 -1.0, %v985_v0  ;;  %1002 = vpow2.f32 %v332_v16  ;;  %v987_v26 = vpop.eup %986  ;;  %v237_v2 = vmin.f32 %v1547_v47, 0.0 }
  0x6d   : > { %v607_v28 = vsel %vm543_vm5, %v1446_v8, %v479_v18  ;;  %v481_v29 = vmul.f32 0.15, %v835_v33  ;;  %v989_v39 = vpop.eup %988  ;;  %v837_v37 = vadd.f32 -1.0, %v987_v26  ;;  %1004 = vpow2.f32 %v334_v25  ;;  %v1616_v33 = vld [vmem:[%s1288_s30 + $0x148] sm:$0xff]  ;;  %v1623_v26 = vld [vmem:[%s1288_s30 + $0x150] sm:$0xff] }
  0x6e   : > { %671 = vst [vmem:[%s1387_s17 + $0xa8] sm:$0xff] %v607_v28  ;;  %v608_v34 = vsel %vm544_vm6, %v1454_v27, %v480_v22  ;;  %v482_v42 = vmul.f32 0.15, %v836_v1  ;;  %v991_v38 = vpop.eup %990  ;;  %v838_v40 = vadd.f32 -1.0, %v989_v39  ;;  %v336_v41 = vmul.f32 1.442695, %v237_v2 }
  0x6f   : > { %672 = vst [vmem:[%s1387_s17 + $0xb0] sm:$0xff] %v608_v34  ;;  %v609_v8 = vsel %vm545_vm7, %v1461_v17, %v481_v29  ;;  %v238_v6 = vmin.f32 %v1551_v36, 0.0  ;;  %v483_v48 = vmul.f32 0.15, %v837_v37  ;;  %v839_v9 = vadd.f32 -1.0, %v991_v38  ;;  %v1631_v2 = vld [vmem:[%s1288_s30 + $0x158] sm:$0xff] }
  0x70   : > { %v993_v46 = vpop.eup %992  ;;  %673 = vst [vmem:[%s1387_s17 + $0xb8] sm:$0xff] %v609_v8  ;;  %v610_v27 = vsel %vm546_vm8, %v1470_v21, %v482_v42  ;;  %vm552_vm14 = vcmp.ge.f32.partialorder %v1512_v50, 0.0  ;;  %v484_v17 = vmul.f32 0.15, %v838_v40  ;;  %1006 = vpow2.f32 %v336_v41  ;;  %v1642_v38 = vld [vmem:[%s1288_s30 + $0x160] sm:$0xff] }
  0x71   : > { %v995_v55 = vpop.eup %994  ;;  %674 = vst [vmem:[%s1387_s17 + $0xc0] sm:$0xff] %v610_v27  ;;  %v840_v49 = vadd.f32 -1.0, %v993_v46  ;;  %v338_v51 = vmul.f32 1.442695, %v238_v6  ;;  %v611_v10 = vsel %vm547_vm9, %v1483_v32, %v483_v48  ;;  %v485_v52 = vmul.f32 0.15, %v839_v9 }
  0x72   : > { %v841_v53 = vadd.f32 -1.0, %v995_v55  ;;  %v239_v21 = vmin.f32 %v1568_v43, 0.0  ;;  %v997_v19 = vpop.eup %996  ;;  %675 = vst [vmem:[%s1387_s17 + $0xc8] sm:$0xff] %v611_v10  ;;  %v612_v58 = vsel %vm548_vm10, %v1490_v35, %v484_v17  ;;  %vm553_vm15 = vcmp.ge.f32.partialorder %v1517_v54, 0.0  ;;  %v1649_v6 = vld [vmem:[%s1288_s30 + $0x168] sm:$0xff]  ;;  %v1656_v55 = vld [vmem:[%s1288_s30 + $0x170] sm:$0xff] }
  0x73   : > { %v486_v59 = vmul.f32 0.15, %v840_v49  ;;  %1008 = vpow2.f32 %v338_v51  ;;  %v999_v32 = vpop.eup %998  ;;  %676 = vst [vmem:[%s1387_s17 + $0xd0] sm:$0xff] %v612_v58  ;;  %v613_v60 = vsel %vm549_vm11, %v1494_v5, %v485_v52  ;;  %v842_v62 = vadd.f32 -1.0, %v997_v19  ;;  %v1663_v52 = vld [vmem:[%s1288_s30 + $0x178] sm:$0xff]  ;;  %v1668_v19 = vld [vmem:[%s1288_s30 + $0x180] sm:$0xff] }
  0x74   : > { %v487_v61 = vmul.f32 0.15, %v841_v53  ;;  %v340_v63 = vmul.f32 1.442695, %v239_v21  ;;  %677 = vst [vmem:[%s1387_s17 + $0xd8] sm:$0xff] %v613_v60  ;;  %v843_v4 = vadd.f32 -1.0, %v999_v32 }
  0x75   : > { %v1001_v3 = vpop.eup %1000  ;;  %v614_v35 = vsel %vm550_vm12, %v1498_v45, %v486_v59  ;;  %vm554_vm0 = vcmp.ge.f32.partialorder %v1521_v57, 0.0  ;;  %v240_v7 = vmin.f32 %v1581_v56, 0.0  ;;  %v488_v12 = vmul.f32 0.15, %v842_v62  ;;  %v1676_v32 = vld [vmem:[%s1288_s30 + $0x188] sm:$0xff] }
  0x76   : > { %v1003_v5 = vpop.eup %1002  ;;  %678 = vst [vmem:[%s1387_s17 + $0xe0] sm:$0xff] %v614_v35  ;;  %v615_v24 = vsel %vm551_vm13, %v1504_v44, %v487_v61  ;;  %v844_v13 = vadd.f32 -1.0, %v1001_v3  ;;  %1010 = vpow2.f32 %v340_v63  ;;  %v489_v45 = vmul.f32 0.15, %v843_v4  ;;  %v1683_v35 = vld [vmem:[%s1288_s30 + $0x190] sm:$0xff] }
  0x77   : > { %679 = vst [vmem:[%s1387_s17 + $0xe8] sm:$0xff] %v615_v24  ;;  %v845_v14 = vadd.f32 -1.0, %v1003_v5  ;;  %v342_v15 = vmul.f32 1.442695, %v240_v7  ;;  %v241_v16 = vmin.f32 %v1593_v31, 0.0  ;;  %v1005_v30 = vpop.eup %1004  ;;  %v616_v0 = vsel %vm552_vm14, %v1512_v50, %v488_v12 }
  0x78   : > { %v490_v18 = vmul.f32 0.15, %v844_v13  ;;  %vm555_vm1 = vcmp.ge.f32.partialorder %v1528_v20, 0.0  ;;  %v242_v44 = vmin.f32 %v1602_v11, 0.0  ;;  %680 = vst [vmem:[%s1387_s17 + $0xf0] sm:$0xff] %v616_v0  ;;  %v617_v22 = vsel %vm553_vm15, %v1517_v54, %v489_v45  ;;  %v1693_v45 = vld [vmem:[%s1288_s30 + $0x198] sm:$0xff] }
  0x79   : > { %v491_v1 = vmul.f32 0.15, %v845_v14  ;;  %v846_v25 = vadd.f32 -1.0, %v1005_v30  ;;  %1012 = vpow2.f32 %v342_v15  ;;  %681 = vst [vmem:[%s1387_s17 + $0xf8] sm:$0xff] %v617_v22  ;;  %vm556_vm2 = vcmp.ge.f32.partialorder %v1536_v23, 0.0  ;;  %v1697_v30 = vld [vmem:[%s1288_s30 + $0x1a0] sm:$0xff] }
  0x7a   : > { %v618_v50 = vsel %vm554_vm0, %v1521_v57, %v490_v18  ;;  %v344_v28 = vmul.f32 1.442695, %v241_v16  ;;  %v346_v29 = vmul.f32 1.442695, %v242_v44  ;;  %v1007_v39 = vpop.eup %1006  ;;  %v243_v42 = vmin.f32 %v1616_v33, 0.0 }
  0x7b   : > { %682 = vst [vmem:[%s1387_s17 + $0x100] sm:$0xff] %v618_v50  ;;  %v619_v54 = vsel %vm555_vm1, %v1528_v20, %v491_v1  ;;  %v492_v34 = vmul.f32 0.15, %v846_v25  ;;  %v847_v37 = vadd.f32 -1.0, %v1007_v39  ;;  %vm557_vm3 = vcmp.ge.f32.partialorder %v1547_v47, 0.0  ;;  %v1708_v39 = vld [vmem:[%s1288_s30 + $0x1a8] sm:$0xff] }
  0x7c   : > { %683 = vst [vmem:[%s1387_s17 + $0x108] sm:$0xff] %v619_v54  ;;  %1014 = vpow2.f32 %v344_v28  ;;  %v244_v57 = vmin.f32 %v1623_v26, 0.0  ;;  %v348_v20 = vmul.f32 1.442695, %v243_v42  ;;  %v245_v41 = vmin.f32 %v1631_v2, 0.0 }
  0x7d   : > { %v1009_v8 = vpop.eup %1008  ;;  %v620_v40 = vsel %vm556_vm2, %v1536_v23, %v492_v34  ;;  %1016 = vpow2.f32 %v346_v29  ;;  %v493_v46 = vmul.f32 0.15, %v847_v37  ;;  %vm558_vm4 = vcmp.ge.f32.partialorder %v1551_v36, 0.0 }
  0x7e   : > { %684 = vst [vmem:[%s1387_s17 + $0x110] sm:$0xff] %v620_v40  ;;  %v848_v27 = vadd.f32 -1.0, %v1009_v8  ;;  %v350_v48 = vmul.f32 1.442695, %v244_v57  ;;  %vm559_vm5 = vcmp.ge.f32.partialorder %v1568_v43, 0.0  ;;  %1018 = vpow2.f32 %v348_v20 }
  0x7f   : > { %v352_v9 = vmul.f32 1.442695, %v245_v41  ;;  %v246_v23 = vmin.f32 %v1642_v38, 0.0  ;;  %v621_v49 = vsel %vm557_vm3, %v1547_v47, %v493_v46  ;;  %v247_v10 = vmin.f32 %v1649_v6, 0.0 }
  0x80   : > { %v1011_v17 = vpop.eup %1010  ;;  %v494_v51 = vmul.f32 0.15, %v848_v27  ;;  %1020 = vpow2.f32 %v350_v48  ;;  %685 = vst [vmem:[%s1387_s17 + $0x118] sm:$0xff] %v621_v49  ;;  %vm560_vm6 = vcmp.ge.f32.partialorder %v1581_v56, 0.0  ;;  %vm561_vm7 = vcmp.ge.f32.partialorder %v1593_v31, 0.0  ;;  %v1721_v27 = vld [vmem:[%s1288_s30 + $0x1b0] sm:$0xff] }
  0x81   : > { %v849_v53 = vadd.f32 -1.0, %v1011_v17  ;;  %1022 = vpow2.f32 %v352_v9  ;;  %v354_v21 = vmul.f32 1.442695, %v246_v23  ;;  %v356_v58 = vmul.f32 1.442695, %v247_v10  ;;  %v1727_v17 = vld [vmem:[%s1288_s30 + $0x1b8] sm:$0xff] }
  0x82   : > { %v622_v47 = vsel %vm558_vm4, %v1551_v36, %v494_v51  ;;  %v248_v59 = vmin.f32 %v1656_v55, 0.0  ;;  %vm562_vm8 = vcmp.ge.f32.partialorder %v1602_v11, 0.0  ;;  %v249_v62 = vmin.f32 %v1663_v52, 0.0 }
  0x83   : > { %v1013_v60 = vpop.eup %1012  ;;  %686 = vst [vmem:[%s1387_s17 + $0x120] sm:$0xff] %v622_v47  ;;  %v495_v61 = vmul.f32 0.15, %v849_v53  ;;  %1024 = vpow2.f32 %v354_v21  ;;  %v250_v3 = vmin.f32 %v1668_v19, 0.0  ;;  %vm563_vm9 = vcmp.ge.f32.partialorder %v1616_v33, 0.0 }
  0x84   : > { %v850_v63 = vadd.f32 -1.0, %v1013_v60  ;;  %1026 = vpow2.f32 %v356_v58  ;;  %v358_v36 = vmul.f32 1.442695, %v248_v59  ;;  %v360_v7 = vmul.f32 1.442695, %v249_v62 }
  0x85   : > { %v623_v4 = vsel %vm559_vm5, %v1568_v43, %v495_v61  ;;  %v251_v5 = vmin.f32 %v1676_v32, 0.0  ;;  %vm564_vm10 = vcmp.ge.f32.partialorder %v1623_v26, 0.0  ;;  %v362_v13 = vmul.f32 1.442695, %v250_v3  ;;  %v1743_v61 = vld [vmem:[%s1288_s30 + $0x1c0] sm:$0xff] }
  0x86   : > { %v1015_v24 = vpop.eup %1014  ;;  %687 = vst [vmem:[%s1387_s17 + $0x128] sm:$0xff] %v623_v4  ;;  %v496_v12 = vmul.f32 0.15, %v850_v63  ;;  %1028 = vpow2.f32 %v358_v36  ;;  %v252_v16 = vmin.f32 %v1683_v35, 0.0  ;;  %vm565_vm11 = vcmp.ge.f32.partialorder %v1631_v2, 0.0 }
  0x87   : > { %v1017_v14 = vpop.eup %1016  ;;  %v851_v15 = vadd.f32 -1.0, %v1015_v24  ;;  %1030 = vpow2.f32 %v360_v7  ;;  %v364_v43 = vmul.f32 1.442695, %v251_v5  ;;  %v253_v25 = vmin.f32 %v1693_v45, 0.0 }
  0x88   : > { %v624_v0 = vsel %vm560_vm6, %v1581_v56, %v496_v12  ;;  %v852_v18 = vadd.f32 -1.0, %v1017_v14  ;;  %1032 = vpow2.f32 %v362_v13  ;;  %v1019_v44 = vpop.eup %1018  ;;  %v366_v1 = vmul.f32 1.442695, %v252_v16  ;;  %v1756_v14 = vld [vmem:[%s1288_s30 + $0x1c8] sm:$0xff] }
  0x89   : > { %688 = vst [vmem:[%s1387_s17 + $0x130] sm:$0xff] %v624_v0  ;;  %v497_v22 = vmul.f32 0.15, %v851_v15  ;;  %1034 = vpow2.f32 %v364_v43  ;;  %v853_v29 = vadd.f32 -1.0, %v1019_v44  ;;  %vm566_vm12 = vcmp.ge.f32.partialorder %v1642_v38, 0.0  ;;  %v1759_v15 = vld [vmem:[%s1288_s30 + $0x1d0] sm:$0xff] }
  0x8a   : > { %v1021_v50 = vpop.eup %1020  ;;  %v498_v28 = vmul.f32 0.15, %v852_v18  ;;  %v254_v56 = vmin.f32 %v1697_v30, 0.0  ;;  %1036 = vpow2.f32 %v366_v1  ;;  %v368_v37 = vmul.f32 1.442695, %v253_v25 }
  0x8b   : > { %v1023_v54 = vpop.eup %1022  ;;  %v625_v34 = vsel %vm561_vm7, %v1593_v31, %v497_v22  ;;  %v854_v42 = vadd.f32 -1.0, %v1021_v50  ;;  %v499_v8 = vmul.f32 0.15, %v853_v29  ;;  %vm567_vm13 = vcmp.ge.f32.partialorder %v1649_v6, 0.0 }
  0x8c   : > { %689 = vst [vmem:[%s1387_s17 + $0x138] sm:$0xff] %v625_v34  ;;  %v626_v57 = vsel %vm562_vm8, %v1602_v11, %v498_v28  ;;  %v855_v40 = vadd.f32 -1.0, %v1023_v54  ;;  %v370_v20 = vmul.f32 1.442695, %v254_v56  ;;  %1038 = vpow2.f32 %v368_v37  ;;  %v1777_v28 = vld [vmem:[%s1288_s30 + $0x1d8] sm:$0xff] }
  0x8d   : > { %v1025_v41 = vpop.eup %1024  ;;  %690 = vst [vmem:[%s1387_s17 + $0x140] sm:$0xff] %v626_v57  ;;  %v500_v46 = vmul.f32 0.15, %v854_v42  ;;  %v255_v31 = vmin.f32 %v1708_v39, 0.0  ;;  %v627_v11 = vsel %vm563_vm9, %v1616_v33, %v499_v8  ;;  %vm568_vm14 = vcmp.ge.f32.partialorder %v1656_v55, 0.0 }
  0x8e   : > { %v1027_v48 = vpop.eup %1026  ;;  %v501_v9 = vmul.f32 0.15, %v855_v40  ;;  %v856_v23 = vadd.f32 -1.0, %v1025_v41  ;;  %1040 = vpow2.f32 %v370_v20  ;;  %691 = vst [vmem:[%s1387_s17 + $0x148] sm:$0xff] %v627_v11  ;;  %vm569_vm15 = vcmp.ge.f32.partialorder %v1663_v52, 0.0  ;;  %v1794_v40 = vld [vmem:[%s1288_s30 + $0x1e8] sm:$0xff] }
  0x8f   : > { %v628_v49 = vsel %vm564_vm10, %v1623_v26, %v500_v46  ;;  %v857_v51 = vadd.f32 -1.0, %v1027_v48  ;;  %v372_v10 = vmul.f32 1.442695, %v255_v31  ;;  %v256_v47 = vmin.f32 %v1721_v27, 0.0  ;;  %v1799_v31 = vld [vmem:[%s1288_s30 + $0x1f0] sm:$0xff] }
  0x90   : > { %v1029_v53 = vpop.eup %1028  ;;  %692 = vst [vmem:[%s1387_s17 + $0x150] sm:$0xff] %v628_v49  ;;  %v629_v33 = vsel %vm565_vm11, %v1631_v2, %v501_v9  ;;  %v502_v21 = vmul.f32 0.15, %v856_v23  ;;  %v257_v60 = vmin.f32 %v1727_v17, 0.0  ;;  %vm570_vm0 = vcmp.ge.f32.partialorder %v1668_v19, 0.0  ;;  %v1803_v9 = vld [vmem:[%s1288_s30 + $0x1f8] sm:$0xff] }
  0x91   : > { %v1031_v58 = vpop.eup %1030  ;;  %693 = vst [vmem:[%s1387_s17 + $0x158] sm:$0xff] %v629_v33  ;;  %v503_v26 = vmul.f32 0.15, %v857_v51  ;;  %v858_v59 = vadd.f32 -1.0, %v1029_v53  ;;  %1042 = vpow2.f32 %v372_v10  ;;  %v374_v36 = vmul.f32 1.442695, %v256_v47 }
  0x92   : > { %v1033_v62 = vpop.eup %1032  ;;  %v630_v2 = vsel %vm566_vm12, %v1642_v38, %v502_v21  ;;  %v859_v63 = vadd.f32 -1.0, %v1031_v58  ;;  %v376_v24 = vmul.f32 1.442695, %v257_v60  ;;  %v258_v38 = vmin.f32 %v1743_v61, 0.0 }
  0x93   : > { %v1035_v3 = vpop.eup %1034  ;;  %694 = vst [vmem:[%s1387_s17 + $0x160] sm:$0xff] %v630_v2  ;;  %v631_v4 = vsel %vm567_vm13, %v1649_v6, %v503_v26  ;;  %v504_v7 = vmul.f32 0.15, %v858_v59  ;;  %v860_v5 = vadd.f32 -1.0, %v1033_v62  ;;  %1044 = vpow2.f32 %v374_v36 }
  0x94   : > { %695 = vst [vmem:[%s1387_s17 + $0x168] sm:$0xff] %v631_v4  ;;  %v505_v12 = vmul.f32 0.15, %v859_v63  ;;  %v861_v13 = vadd.f32 -1.0, %v1035_v3  ;;  %v1037_v43 = vpop.eup %1036  ;;  %vm571_vm1 = vcmp.ge.f32.partialorder %v1676_v32, 0.0  ;;  %1046 = vpow2.f32 %v376_v24 }
  0x95   : > { %v632_v6 = vsel %vm568_vm14, %v1656_v55, %v504_v7  ;;  %v506_v16 = vmul.f32 0.15, %v860_v5  ;;  %v862_v44 = vadd.f32 -1.0, %v1037_v43  ;;  %v378_v22 = vmul.f32 1.442695, %v258_v38 }
  0x96   : > { %696 = vst [vmem:[%s1387_s17 + $0x170] sm:$0xff] %v632_v6  ;;  %v633_v0 = vsel %vm569_vm15, %v1663_v52, %v505_v12  ;;  %v507_v18 = vmul.f32 0.15, %v861_v13  ;;  %v1039_v1 = vpop.eup %1038  ;;  %vm572_vm2 = vcmp.ge.f32.partialorder %v1683_v35, 0.0  ;;  %v259_v25 = vmin.f32 %v1756_v14, 0.0 }
  0x97   : > { %697 = vst [vmem:[%s1387_s17 + $0x178] sm:$0xff] %v633_v0  ;;  %v634_v55 = vsel %vm570_vm0, %v1668_v19, %v506_v16  ;;  %v260_v50 = vmin.f32 %v1759_v15, 0.0  ;;  %v508_v56 = vmul.f32 0.15, %v862_v44  ;;  %v863_v54 = vadd.f32 -1.0, %v1039_v1  ;;  %v1784_v19 = vld [vmem:[%s1288_s30 + $0x1e0] sm:$0xff] }
  0x98   : > { %v1041_v52 = vpop.eup %1040  ;;  %698 = vst [vmem:[%s1387_s17 + $0x180] sm:$0xff] %v634_v55  ;;  %v635_v29 = vsel %vm571_vm1, %v1676_v32, %v507_v18  ;;  %1048 = vpow2.f32 %v378_v22  ;;  %vm573_vm3 = vcmp.ge.f32.partialorder %v1693_v45, 0.0  ;;  %v380_v42 = vmul.f32 1.442695, %v259_v25 }
  0x99   : > { %699 = vst [vmem:[%s1387_s17 + $0x188] sm:$0xff] %v635_v29  ;;  %v864_v34 = vadd.f32 -1.0, %v1041_v52  ;;  %v382_v37 = vmul.f32 1.442695, %v260_v50  ;;  %v636_v57 = vsel %vm572_vm2, %v1683_v35, %v508_v56  ;;  %v509_v32 = vmul.f32 0.15, %v863_v54 }
  0x9a   : > { %vm574_vm4 = vcmp.ge.f32.partialorder %v1697_v30, 0.0  ;;  %v261_v8 = vmin.f32 %v1777_v28, 0.0  ;;  %700 = vst [vmem:[%s1387_s17 + $0x190] sm:$0xff] %v636_v57  ;;  %1050 = vpow2.f32 %v380_v42  ;;  %v262_v46 = vmin.f32 %v1784_v19, 0.0 }
  0x9b   : > { %v1043_v20 = vpop.eup %1042  ;;  %v510_v41 = vmul.f32 0.15, %v864_v34  ;;  %v637_v48 = vsel %vm573_vm3, %v1693_v45, %v509_v32  ;;  %1052 = vpow2.f32 %v382_v37  ;;  %vm575_vm5 = vcmp.ge.f32.partialorder %v1708_v39, 0.0 }
  0x9c   : > { %v865_v35 = vadd.f32 -1.0, %v1043_v20  ;;  %v384_v11 = vmul.f32 1.442695, %v261_v8  ;;  %701 = vst [vmem:[%s1387_s17 + $0x198] sm:$0xff] %v637_v48  ;;  %v386_v49 = vmul.f32 1.442695, %v262_v46 }
  0x9d   : > { %v638_v23 = vsel %vm574_vm4, %v1697_v30, %v510_v41  ;;  %v263_v51 = vmin.f32 %v1794_v40, 0.0  ;;  %v1045_v10 = vpop.eup %1044  ;;  %v264_v45 = vmin.f32 %v1799_v31, 0.0  ;;  %v265_v58 = vmin.f32 %v1803_v9, 0.0 }
  0x9e   : > { %702 = vst [vmem:[%s1387_s17 + $0x1a0] sm:$0xff] %v638_v23  ;;  %v511_v53 = vmul.f32 0.15, %v865_v35  ;;  %1054 = vpow2.f32 %v384_v11  ;;  %v1047_v33 = vpop.eup %1046  ;;  %v866_v21 = vadd.f32 -1.0, %v1045_v10  ;;  %vm576_vm6 = vcmp.ge.f32.partialorder %v1721_v27, 0.0 }
  0x9f   : > { %1056 = vpow2.f32 %v386_v49  ;;  %v388_v47 = vmul.f32 1.442695, %v263_v51  ;;  %v867_v26 = vadd.f32 -1.0, %v1047_v33  ;;  %v390_v59 = vmul.f32 1.442695, %v264_v45 }
  0xa0   : > { %v639_v30 = vsel %vm575_vm5, %v1708_v39, %v511_v53  ;;  %v512_v60 = vmul.f32 0.15, %v866_v21  ;;  %vm577_vm7 = vcmp.ge.f32.partialorder %v1727_v17, 0.0  ;;  %v392_v62 = vmul.f32 1.442695, %v265_v58 }
  0xa1   : > { %703 = vst [vmem:[%s1387_s17 + $0x1a8] sm:$0xff] %v639_v30  ;;  %1058 = vpow2.f32 %v388_v47  ;;  %v513_v63 = vmul.f32 0.15, %v867_v26  ;;  %vm578_vm8 = vcmp.ge.f32.partialorder %v1743_v61, 0.0  ;;  %vm579_vm9 = vcmp.ge.f32.partialorder %v1756_v14, 0.0 }
  0xa2   : > { %v1049_v2 = vpop.eup %1048  ;;  %1060 = vpow2.f32 %v390_v59  ;;  %v640_v36 = vsel %vm576_vm6, %v1721_v27, %v512_v60  ;;  %vm580_vm10 = vcmp.ge.f32.partialorder %v1759_v15, 0.0  ;;  %vm581_vm11 = vcmp.ge.f32.partialorder %v1777_v28, 0.0 }
  0xa3   : > { %v868_v3 = vadd.f32 -1.0, %v1049_v2  ;;  %1062 = vpow2.f32 %v392_v62  ;;  %704 = vst [vmem:[%s1387_s17 + $0x1b0] sm:$0xff] %v640_v36  ;;  %v641_v39 = vsel %vm577_vm7, %v1727_v17, %v513_v63  ;;  %vm582_vm12 = vcmp.ge.f32.partialorder %v1784_v19, 0.0 }
  0xa4   : > { %v1051_v4 = vpop.eup %1050  ;;  %705 = vst [vmem:[%s1387_s17 + $0x1b8] sm:$0xff] %v641_v39  ;;  %vm583_vm13 = vcmp.ge.f32.partialorder %v1794_v40, 0.0  ;;  %vm584_vm14 = vcmp.ge.f32.partialorder %v1799_v31, 0.0  ;;  %vm585_vm15 = vcmp.ge.f32.partialorder %v1803_v9, 0.0 }
  0xa5   : > { %v514_v7 = vmul.f32 0.15, %v868_v3  ;;  %v1053_v5 = vpop.eup %1052  ;;  %v869_v24 = vadd.f32 -1.0, %v1051_v4 }
  0xa6   : > { %v870_v13 = vadd.f32 -1.0, %v1053_v5 }
  0xa7   : > { %v642_v12 = vsel %vm578_vm8, %v1743_v61, %v514_v7  ;;  %v515_v27 = vmul.f32 0.15, %v869_v24 }
  0xa8   : > { %v1055_v38 = vpop.eup %1054  ;;  %706 = vst [vmem:[%s1387_s17 + $0x1c0] sm:$0xff] %v642_v12  ;;  %v516_v43 = vmul.f32 0.15, %v870_v13 }
  0xa9   : > { %v1057_v17 = vpop.eup %1056  ;;  %v871_v6 = vadd.f32 -1.0, %v1055_v38  ;;  %v643_v16 = vsel %vm579_vm9, %v1756_v14, %v515_v27 }
  0xaa   : > { %v872_v0 = vadd.f32 -1.0, %v1057_v17  ;;  %707 = vst [vmem:[%s1387_s17 + $0x1c8] sm:$0xff] %v643_v16  ;;  %v644_v18 = vsel %vm580_vm10, %v1759_v15, %v516_v43 }
  0xab   : > { %v1059_v61 = vpop.eup %1058  ;;  %v517_v44 = vmul.f32 0.15, %v871_v6  ;;  %708 = vst [vmem:[%s1387_s17 + $0x1d0] sm:$0xff] %v644_v18 }
  0xac   : > { %v1061_v22 = vpop.eup %1060  ;;  %v518_v1 = vmul.f32 0.15, %v872_v0  ;;  %v873_v55 = vadd.f32 -1.0, %v1059_v61 }
  0xad   : > { %v1063_v25 = vpop.eup %1062  ;;  %v645_v14 = vsel %vm581_vm11, %v1777_v28, %v517_v44  ;;  %v874_v50 = vadd.f32 -1.0, %v1061_v22 }
  0xae   : > { %709 = vst [vmem:[%s1387_s17 + $0x1d8] sm:$0xff] %v645_v14  ;;  %v646_v15 = vsel %vm582_vm12, %v1784_v19, %v518_v1  ;;  %v519_v52 = vmul.f32 0.15, %v873_v55  ;;  %v875_v29 = vadd.f32 -1.0, %v1063_v25 }
  0xaf   : > { %710 = vst [vmem:[%s1387_s17 + $0x1e0] sm:$0xff] %v646_v15  ;;  %v520_v56 = vmul.f32 0.15, %v874_v50 }
  0xb0   : > { %v647_v28 = vsel %vm583_vm13, %v1794_v40, %v519_v52  ;;  %v521_v54 = vmul.f32 0.15, %v875_v29 }
  0xb1   : > { %711 = vst [vmem:[%s1387_s17 + $0x1e8] sm:$0xff] %v647_v28  ;;  %v648_v19 = vsel %vm584_vm14, %v1799_v31, %v520_v56 }
  0xb2   : > { %712 = vst [vmem:[%s1387_s17 + $0x1f0] sm:$0xff] %v648_v19  ;;  %v649_v34 = vsel %vm585_vm15, %v1803_v9, %v521_v54 }
  0xb3   : > { %713 = vst [vmem:[%s1387_s17 + $0x1f8] sm:$0xff] %v649_v34 }
  0xb4   : > { %1107 = shalt.err (!%p1104_p2)
}
  0xb5   : > { %s1108_s13 = scalar_lea.hbm %s1844_s29, 8192  ;;  %s1112_s20 = scalar_lea.hbm %s1896_s1, 16384 }
  0xb6   : > { %p1109_p4 = scmp.ne.s32.totalorder %s1844_s29, %s1108_s13  ;;  %p1113_p9 = scmp.lt.u32.totalorder %s1844_s29, %s1896_s1 }
  0xb7   : > { %p1114_p1 = scmp.lt.u32.totalorder %s1112_s20, %s1108_s13  ;;  %p1116_p6 = scmp.lt.u32.totalorder %s1108_s13, %s1844_s29 }
  0xb8   : > { %p1110_p5 = pnand %p1109_p4, %p1903_p11 }
  0xb9   : > { %p1115_p3 = por %p1114_p1, %p1113_p9 }
  0xba   : > { %p1111_p7 = pneg %p1110_p5 }
  0xbb   : > { %p1117_p12 = por %p1116_p6, %p1115_p3 }
  0xbd   : > { %p1118_p13 = pnand %p1117_p12, %p1111_p7 }
  0xbf   : > { %1121 = shalt.err (!%p1118_p13)
}
  0xc0   : > { %s1166_s24 = smov 512   ;;  %s1167_s26 = smov 32  }
  0xc1   : > { %888 = dma.vmem_to_hbm [thread:$0]  (%p1903_p11), %s1846_s27, 8192, %s1844_s29, %s715_s2, %s1166_s24, %s1166_s24, %s1167_s26  }
  0xc2 PF: > { %s744_s30 = sand.u32 1, %s1148_s6   ;;  %p1904_p8 = scmp.ne.s32.totalorder %s1901_s19, 0 }
  0xc3   : > { %p1905_p10 = scmp.ge.s32.totalorder %s1160_s9, 2  ;;  %s745_s17 = scalar_lea.sflag [#allocation4], %s744_s30 }
  0xc5   : > { %p895_p0 = pnand %p1905_p10, %p1904_p8 }
  0xc7   : > { %1143 = dma.done.wait (!%p895_p0), %s745_s17, 8192  }
  0xc8   : > { %1145 = vsyncadd (!%p895_p0), %s745_s17, 4294959104  ;;  %p14_p2 = scmp.ge.s32.totalorder %s1203_s12, 4   ;;  %s1906_s6 = smov %s1152_s7 }
  0xc9   : > { %s1907_s7 = smov %s1156_s8  ;;  %s1908_s8 = smov %s1215_s15 }
  0xca   : > { %s1909_s9 = smov %s1203_s12  ;;  %16 = sbr.rel (!%p14_p2) target bundleno = 5 (0x5), region = 69 }
  0xd1   :  { %750 = vsyncpa [#allocation3], 1 }
  0xd2   :  { %752 = vsyncpa [#allocation3 + $0x1], 1 }
  0xd3   :  { %753 = vsyncpa [#allocation4], 1 }
  0xd4   :  { %755 = vsyncpa [#allocation4 + $0x1], 1 }

</bundles_post_ra>
